<compile_context>
chip_gen: v6e
topology: v6e:2x2x1
jax: 0.10.0
libtpu: 0.0.40
codegen_flags: <defaults>
</compile_context>

<pallas_src>
import functools
import math

import jax
import jax.numpy as jnp
from jax import lax
from jax.experimental import pallas as pl
from jax.experimental.pallas import tpu as pltpu

_HIDDEN = 64          # true hidden width of the PyTorch module
_LANE = 128           # padded lane width for the hidden activations
_DEFAULT_TM = 2048    # batch-tile rows per grid step


def _round_up(x, m):
    return ((x + m - 1) // m) * m


def _qnet_kernel(x_ref, w1_ref, b12_ref, w2_ref, w3_ref, b3_ref, o_ref, *,
                 continuous):
    # fc1 + ReLU : (TM, S)bf16 @ (S, 128)bf16 -> f32 accum, f32 epilogue
    h1 = jnp.dot(x_ref[...], w1_ref[...], preferred_element_type=jnp.float32)
    h1 = jnp.maximum(h1 + b12_ref[0:1, :], 0.0)
    # fc2 + ReLU : padded rows/cols of w2 are zero, so padded lanes stay 0
    h2 = jnp.dot(h1.astype(jnp.bfloat16), w2_ref[...],
                 preferred_element_type=jnp.float32)
    h2 = jnp.maximum(h2 + b12_ref[1:2, :], 0.0)
    # fc3 computed transposed so the output is lane-dense along batch:
    # contract w3 dim 0 (hidden) with h2 dim 1 (hidden) -> (OUT_PAD, TM)
    out_t = lax.dot_general(
        w3_ref[...], h2.astype(jnp.bfloat16),
        dimension_numbers=(((0,), (1,)), ((), ())),
        preferred_element_type=jnp.float32)
    out_t = out_t + b3_ref[...]          # b3: (OUT_PAD, 1), lane-broadcast
    if continuous:
        out_t = jnp.tanh(out_t)
    o_ref[...] = out_t


def prepare_qnetwork_params(params):
    """Pad / bf16-cast raw params once (cacheable across forward calls)."""
    w1, b1 = params["w1"], params["b1"]
    w2, b2 = params["w2"], params["b2"]
    w3, b3 = params["w3"], params["b3"]
    state_dim = w1.shape[0]
    out_dim = w3.shape[1]
    assert out_dim <= _LANE, "action_dim > 128 not supported by this kernel"
    out_pad = max(8, _round_up(out_dim, 8))

    w1_p = (jnp.zeros((state_dim, _LANE), jnp.float32)
            .at[:, :_HIDDEN].set(w1).astype(jnp.bfloat16))
    w2_p = (jnp.zeros((_LANE, _LANE), jnp.float32)
            .at[:_HIDDEN, :_HIDDEN].set(w2).astype(jnp.bfloat16))
    w3_p = (jnp.zeros((_LANE, out_pad), jnp.float32)
            .at[:_HIDDEN, :out_dim].set(w3).astype(jnp.bfloat16))
    # b1 / b2 packed into one resident (2, 128) f32 array (fewer in_specs)
    b12_p = (jnp.zeros((2, _LANE), jnp.float32)
             .at[0, :_HIDDEN].set(b1).at[1, :_HIDDEN].set(b2))
    # b3 laid out on sublanes to match the transposed output
    b3_p = jnp.zeros((out_pad, 1), jnp.float32).at[:out_dim, 0].set(b3)

    return {"w1": w1_p, "w2": w2_p, "w3": w3_p, "b12": b12_p, "b3": b3_p,
            "state_dim": state_dim, "out_dim": out_dim, "out_pad": out_pad}


def qnetwork_forward(x, prepared, *, continuous=False, tm=_DEFAULT_TM):
    """x: (batch, state_dim) float32. prepared: output of prepare_qnetwork_params."""
    w1_p, w2_p, w3_p = prepared["w1"], prepared["w2"], prepared["w3"]
    b12_p, b3_p = prepared["b12"], prepared["b3"]
    state_dim = prepared["state_dim"]
    out_dim = prepared["out_dim"]
    out_pad = prepared["out_pad"]

    batch = x.shape[0]
    assert x.shape == (batch, state_dim)

    # bf16 MXU operands; pad batch only to a lane multiple (single cheap pad)
    x_bf = x.astype(jnp.bfloat16)
    padded_batch = _round_up(max(batch, 1), _LANE)
    if padded_batch != batch:
        x_bf = jnp.pad(x_bf, ((0, padded_batch - batch), (0, 0)))

    tm = max(_LANE, (tm // _LANE) * _LANE)
    # keep >= 2 grid steps when possible so v7x can shard across both TCs
    tm_eff = min(tm, _round_up(pl.cdiv(padded_batch, 2), _LANE))
    grid = (pl.cdiv(padded_batch, tm_eff),)   # ragged tail tile is masked

    def resident(shape):
        # same block every step -> stays in VMEM, no re-DMA
        return pl.BlockSpec(shape, lambda i: (0, 0))

    kernel = functools.partial(_qnet_kernel, continuous=continuous)

    out_t = pl.pallas_call(
        kernel,
        out_shape=jax.ShapeDtypeStruct((out_pad, padded_batch), jnp.float32),
        grid=grid,
        in_specs=[
            pl.BlockSpec((tm_eff, state_dim), lambda i: (i, 0)),
            resident(w1_p.shape),
            resident(b12_p.shape),
            resident(w2_p.shape),
            resident(w3_p.shape),
            resident(b3_p.shape),
        ],
        out_specs=pl.BlockSpec((out_pad, tm_eff), lambda i: (0, i)),
        compiler_params=pltpu.CompilerParams(
            dimension_semantics=("parallel",)),
    )(x_bf, w1_p, b12_p, w2_p, w3_p, b3_p)

    # undo the transpose / padding in the wrapper (tiny)
    return out_t[:out_dim, :batch].T


def init_qnetwork_params(key, state_dim, action_dim, continuous=False):
    """Deterministic init mimicking PyTorch nn.Linear default
    (uniform(-1/sqrt(fan_in), 1/sqrt(fan_in))). Weights stored (in, out)."""
    out3 = action_dim if not continuous else 1
    dims = [(state_dim, _HIDDEN), (_HIDDEN, _HIDDEN), (_HIDDEN, out3)]
    params = {}
    for idx, (fan_in, fan_out) in enumerate(dims, start=1):
        key, kw, kb = jax.random.split(key, 3)
        bound = 1.0 / math.sqrt(fan_in)
        params[f"w{idx}"] = jax.random.uniform(
            kw, (fan_in, fan_out), jnp.float32, -bound, bound)
        params[f"b{idx}"] = jax.random.uniform(
            kb, (fan_out,), jnp.float32, -bound, bound)
    return params


def _reference_forward(x, params, *, continuous=False):
    """Plain-JAX reference mimicking the kernel's bf16-operand / f32-accum math."""
    bf, f32 = jnp.bfloat16, jnp.float32
    h1 = jnp.maximum(
        jnp.dot(x.astype(bf), params["w1"].astype(bf),
                preferred_element_type=f32) + params["b1"], 0.0)
    h2 = jnp.maximum(
        jnp.dot(h1.astype(bf), params["w2"].astype(bf),
                preferred_element_type=f32) + params["b2"], 0.0)
    out = jnp.dot(h2.astype(bf), params["w3"].astype(bf),
                  preferred_element_type=f32) + params["b3"]
    return jnp.tanh(out) if continuous else out


if __name__ == "__main__":
    # NOTE: at CartPole scale (batch=2) this is launch-overhead bound; the
    # kernel pays off once the batch axis is in the thousands (vectorized
    # envs / replay-buffer batches).
    batch, state_dim, action_dim = 2, 4, 2

    key = jax.random.PRNGKey(0)
    key, kx = jax.random.split(key)
    x = jax.random.normal(kx, (batch, state_dim), jnp.float32)

    # --- discrete head (CartPole DQN) ---
    params_d = init_qnetwork_params(key, state_dim, action_dim, continuous=False)
    prep_d = prepare_qnetwork_params(params_d)
    q_values = qnetwork_forward(x, prep_d, continuous=False)
    jax.block_until_ready(q_values)
    assert q_values.shape == (batch, action_dim)
    assert q_values.dtype == jnp.float32
    ref_d = _reference_forward(x, params_d, continuous=False)
    assert jnp.allclose(q_values, ref_d, atol=2e-3, rtol=2e-3)

    # --- continuous head (tanh, out width 1) ---
    params_c = init_qnetwork_params(key, state_dim, action_dim, continuous=True)
    prep_c = prepare_qnetwork_params(params_c)
    q_cont = qnetwork_forward(x, prep_c, continuous=True)
    jax.block_until_ready(q_cont)
    assert q_cont.shape == (batch, 1)
    ref_c = _reference_forward(x, params_c, continuous=True)
    assert jnp.allclose(q_cont, ref_c, atol=2e-3, rtol=2e-3)

    # --- ragged batch: exercises multi-step grid + masked tail tile ---
    key, kx2 = jax.random.split(key)
    xb = jax.random.normal(kx2, (300, state_dim), jnp.float32)
    qb = qnetwork_forward(xb, prep_d, continuous=False)
    jax.block_until_ready(qb)
    assert qb.shape == (300, action_dim)
    ref_b = _reference_forward(xb, params_d, continuous=False)
    assert jnp.allclose(qb, ref_b, atol=2e-3, rtol=2e-3)

    print("KERNEL_OK")
</pallas_src>

<mosaic_0001>
module attributes {stable_mosaic.version = 11 : i64} {
  func.func @_qnet_kernel(%arg0: i32, %arg1: memref<128x4xbf16, #tpu.memory_space<vmem>>, %arg2: memref<4x128xbf16, #tpu.memory_space<vmem>>, %arg3: memref<2x128xf32, #tpu.memory_space<vmem>>, %arg4: memref<128x128xbf16, #tpu.memory_space<vmem>>, %arg5: memref<128x8xbf16, #tpu.memory_space<vmem>>, %arg6: memref<8x1xf32, #tpu.memory_space<vmem>>, %arg7: memref<8x128xf32, #tpu.memory_space<vmem>>) attributes {dimension_semantics = [#tpu.dimension_semantics<parallel>], iteration_bounds = array<i64: 1>, scalar_prefetch = 0 : i64, scratch_operands = 0 : i64, tpu.core_type = #tpu.core_type<tc>, window_params = [{transform_indices = @transform_0, window_bounds = array<i64: 128, 4>}, {pipeline_mode = #tpu.pipeline_mode<synchronous>, transform_indices = @transform_1, window_bounds = array<i64: 4, 128>}, {pipeline_mode = #tpu.pipeline_mode<synchronous>, transform_indices = @transform_2, window_bounds = array<i64: 2, 128>}, {pipeline_mode = #tpu.pipeline_mode<synchronous>, transform_indices = @transform_3, window_bounds = array<i64: 128, 128>}, {pipeline_mode = #tpu.pipeline_mode<synchronous>, transform_indices = @transform_4, window_bounds = array<i64: 128, 8>}, {pipeline_mode = #tpu.pipeline_mode<synchronous>, transform_indices = @transform_5, window_bounds = array<i64: 8, 1>}, {transform_indices = @transform_6, window_bounds = array<i64: 8, 128>}]} {
    %c0 = arith.constant 0 : index
    %c0_0 = arith.constant 0 : index
    %0 = vector.load %arg1[%c0, %c0_0] : memref<128x4xbf16, #tpu.memory_space<vmem>>, vector<128x4xbf16>
    %c0_1 = arith.constant 0 : index
    %c0_2 = arith.constant 0 : index
    %1 = vector.load %arg2[%c0_1, %c0_2] : memref<4x128xbf16, #tpu.memory_space<vmem>>, vector<4x128xbf16>
    %cst = arith.constant dense<0.000000e+00> : vector<128x128xf32>
    %2 = tpu.matmul %0, %1, %cst {dimension_numbers = #tpu.dot_dimension_numbers<[1], [0], [0], [1], [0, 0, 1, 1], [], []>} : vector<128x4xbf16>, vector<4x128xbf16>, vector<128x128xf32> -> vector<128x128xf32>
    %c0_3 = arith.constant 0 : index
    %c0_4 = arith.constant 0 : index
    %3 = vector.load %arg3[%c0_3, %c0_4] : memref<2x128xf32, #tpu.memory_space<vmem>>, vector<1x128xf32>
    %4 = vector.broadcast %3 : vector<1x128xf32> to vector<128x128xf32>
    %5 = arith.addf %2, %4 : vector<128x128xf32>
    %cst_5 = arith.constant 0.000000e+00 : f32
    %6 = vector.broadcast %cst_5 : f32 to vector<128x128xf32>
    %7 = arith.maximumf %5, %6 : vector<128x128xf32>
    %8 = arith.truncf %7 : vector<128x128xf32> to vector<128x128xbf16>
    %c0_6 = arith.constant 0 : index
    %c0_7 = arith.constant 0 : index
    %9 = vector.load %arg4[%c0_6, %c0_7] : memref<128x128xbf16, #tpu.memory_space<vmem>>, vector<128x128xbf16>
    %cst_8 = arith.constant dense<0.000000e+00> : vector<128x128xf32>
    %10 = tpu.matmul %8, %9, %cst_8 {dimension_numbers = #tpu.dot_dimension_numbers<[1], [0], [0], [1], [0, 0, 1, 1], [], []>} : vector<128x128xbf16>, vector<128x128xbf16>, vector<128x128xf32> -> vector<128x128xf32>
    %c1 = arith.constant 1 : index
    %c0_9 = arith.constant 0 : index
    %11 = vector.load %arg3[%c1, %c0_9] : memref<2x128xf32, #tpu.memory_space<vmem>>, vector<1x128xf32>
    %12 = vector.broadcast %11 : vector<1x128xf32> to vector<128x128xf32>
    %13 = arith.addf %10, %12 : vector<128x128xf32>
    %cst_10 = arith.constant 0.000000e+00 : f32
    %14 = vector.broadcast %cst_10 : f32 to vector<128x128xf32>
    %15 = arith.maximumf %13, %14 : vector<128x128xf32>
    %c0_11 = arith.constant 0 : index
    %c0_12 = arith.constant 0 : index
    %16 = vector.load %arg5[%c0_11, %c0_12] : memref<128x8xbf16, #tpu.memory_space<vmem>>, vector<128x8xbf16>
    %17 = arith.truncf %15 : vector<128x128xf32> to vector<128x128xbf16>
    %cst_13 = arith.constant dense<0.000000e+00> : vector<8x128xf32>
    %18 = tpu.matmul %16, %17, %cst_13 {dimension_numbers = #tpu.dot_dimension_numbers<[0], [1], [1], [0], [0, 1, 1, 0], [], []>} : vector<128x8xbf16>, vector<128x128xbf16>, vector<8x128xf32> -> vector<8x128xf32>
    %c0_14 = arith.constant 0 : index
    %c0_15 = arith.constant 0 : index
    %19 = vector.load %arg6[%c0_14, %c0_15] : memref<8x1xf32, #tpu.memory_space<vmem>>, vector<8x1xf32>
    %20 = vector.broadcast %19 : vector<8x1xf32> to vector<8x128xf32>
    %21 = arith.addf %18, %20 : vector<8x128xf32>
    %c0_16 = arith.constant 0 : index
    %c0_17 = arith.constant 0 : index
    %22 = vector.load %arg7[%c0_16, %c0_17] : memref<8x128xf32, #tpu.memory_space<vmem>>, vector<8x128xf32>
    tpu.vector_store %arg7[%c0_16, %c0_17], %21 {strides = array<i32>} : memref<8x128xf32, #tpu.memory_space<vmem>>, vector<8x128xf32>,
    return
  }
  func.func @transform_0(%arg0: i32) -> (i32, i32) {
    %c0_i32 = arith.constant 0 : i32
    %c0_i32_0 = arith.constant 0 : i32
    return %arg0, %c0_i32 : i32, i32
  }
  func.func @transform_1(%arg0: i32) -> (i32, i32) {
    %c0_i32 = arith.constant 0 : i32
    %c0_i32_0 = arith.constant 0 : i32
    %c0_i32_1 = arith.constant 0 : i32
    return %c0_i32, %c0_i32_0 : i32, i32
  }
  func.func @transform_2(%arg0: i32) -> (i32, i32) {
    %c0_i32 = arith.constant 0 : i32
    %c0_i32_0 = arith.constant 0 : i32
    %c0_i32_1 = arith.constant 0 : i32
    return %c0_i32, %c0_i32_0 : i32, i32
  }
  func.func @transform_3(%arg0: i32) -> (i32, i32) {
    %c0_i32 = arith.constant 0 : i32
    %c0_i32_0 = arith.constant 0 : i32
    %c0_i32_1 = arith.constant 0 : i32
    return %c0_i32, %c0_i32_0 : i32, i32
  }
  func.func @transform_4(%arg0: i32) -> (i32, i32) {
    %c0_i32 = arith.constant 0 : i32
    %c0_i32_0 = arith.constant 0 : i32
    %c0_i32_1 = arith.constant 0 : i32
    return %c0_i32, %c0_i32_0 : i32, i32
  }
  func.func @transform_5(%arg0: i32) -> (i32, i32) {
    %c0_i32 = arith.constant 0 : i32
    %c0_i32_0 = arith.constant 0 : i32
    %c0_i32_1 = arith.constant 0 : i32
    return %c0_i32, %c0_i32_0 : i32, i32
  }
  func.func @transform_6(%arg0: i32) -> (i32, i32) {
    %c0_i32 = arith.constant 0 : i32
    %c0_i32_0 = arith.constant 0 : i32
    return %c0_i32, %arg0 : i32, i32
  }
}

</mosaic_0001>

<bundles_post_ra>
// kernel: tpu_custom_call.1
= control target key start
LH: loop header
LB: loop body
LE: loop exit
PB: predicated region body
PF: predicated region fallthrough
CT: control target
= control target key end

     0   :  { %vm112_vm0 = vcmask 1041408   ;;  %vm87_vm1 = vcmask 31744   ;;  %s902_s0 = inlined_call_operand.vmem [shape: bf16[128,4], index: 0, kind: input, shape index: {}]   ;;  %s903_s1 = inlined_call_operand.vmem [shape: bf16[4,128], index: 1, kind: input, shape index: {}]   ;;  %s904_s2 = inlined_call_operand.vmem [shape: f32[2,128], index: 2, kind: input, shape index: {}]   ;;  %s905_s3 = inlined_call_operand.vmem [shape: bf16[128,128], index: 3, kind: input, shape index: {}]   ;;  %s906_s4 = inlined_call_operand.vmem [shape: bf16[128,8], index: 4, kind: input, shape index: {}]   ;;  %s907_s5 = inlined_call_operand.vmem [shape: f32[8,1], index: 5, kind: input, shape index: {}]   ;;  %s908_s6 = inlined_call_operand.hbm [shape: f32[8,128], index: 6, kind: output, shape index: {}]  }
   0x1   :  { %v41_v0 = vld [vmem:[%s903_s1] sm:$0x3]  ;;  %v714_v3 = vld [vmem:[%s902_s0 + $0x8] sm:$0xff]   ;;  %v715_v4 = vld [vmem:[%s902_s0 + $0x10] sm:$0xff]  }
   0x2   :  { %v713_v1 = vld [vmem:[%s902_s0] sm:$0xff]   ;;  %706 = vmatprep.subr.msk.bf16.mxu1 %vm112_vm0, %v41_v0  ;;  %v114_v2 = vsel %vm112_vm0, %v41_v0, 0  ;;  %v716_v5 = vld [vmem:[%s902_s0 + $0x18] sm:$0xff]   ;;  %v722_v8 = vld [vmem:[%s905_s3 + $0x30] sm:$0xff]  }
   0x3   :  { %637 = vmatpush3.bf16.msra.mxu1 %v114_v2  ;;  %638 = vmatprep.mubr.msk.bf16.mxu1 %vm87_vm1, %v713_v1  ;;  %v717_v6 = vld [vmem:[%s902_s0 + $0x20] sm:$0xff]   ;;  %v721_v7 = vld [vmem:[%s905_s3 + $0x38] sm:$0xff]   ;;  %v723_v9 = vld [vmem:[%s905_s3 + $0x28] sm:$0xff]  }
   0x4   :  { %654 = vmatprep.subr.bf16.mxu1 %v721_v7  ;;  %v718_v10 = vld [vmem:[%s902_s0 + $0x28] sm:$0xff]   ;;  %v724_v11 = vld [vmem:[%s905_s3 + $0x20] sm:$0xff]   ;;  %v719_v12 = vld [vmem:[%s902_s0 + $0x30] sm:$0xff]  }
   0x5   :  { %v725_v13 = vld [vmem:[%s905_s3 + $0x18] sm:$0xff]  }
   0x6   :  { %639 = vmatmul.mubr.msk.bf16.vlgmr.msra.gmra.mxu1 %vm87_vm1, %v714_v3 }
   0x7   :  { %642 = vmatprep.mubr.msk.bf16.mxu1 %vm87_vm1, %v715_v4  ;;  %655 = vmatpush3.bf16.msra.mxu1 %v721_v7 }
   0x8   :  { %656 = vmatprep.subr.bf16.mxu1 %v722_v8 }
   0xb   :  { %657 = vmatpush3.bf16.msra.mxu1 %v722_v8 }
   0xc   :  { %658 = vmatprep.subr.bf16.mxu1 %v723_v9 }
   0xe   :  { %643 = vmatmul.mubr.msk.bf16.gmra.mxu1 %vm87_vm1, %v716_v5 }
   0xf   :  { %646 = vmatprep.mubr.msk.bf16.mxu1 %vm87_vm1, %v717_v6  ;;  %659 = vmatpush3.bf16.msra.mxu1 %v723_v9 }
  0x10   :  { %660 = vmatprep.subr.bf16.mxu1 %v724_v11 }
  0x16   :  { %647 = vmatmul.mubr.msk.bf16.gmra.mxu1 %vm87_vm1, %v718_v10 }
  0x17   :  { %11 = vsyncpa [#allocation3], 0  ;;  %650 = vmatprep.mubr.msk.bf16.mxu1 %vm87_vm1, %v719_v12  ;;  %661 = vmatpush3.bf16.msra.mxu1 %v724_v11  ;;  %v720_v14 = vld [vmem:[%s902_s0 + $0x38] sm:$0xff]   ;;  %v726_v15 = vld [vmem:[%s905_s3 + $0x10] sm:$0xff]   ;;  %vm760_vm2 = vmmov 0  }
  0x18   :  { %662 = vmatprep.subr.bf16.mxu1 %v725_v13  ;;  %v727_v16 = vld [vmem:[%s905_s3 + $0x8] sm:$0xff]   ;;  %v728_v17 = vld [vmem:[%s905_s3] sm:$0xff]  }
  0x19   :  { %v729_v18 = vld [vmem:[%s906_s4] sm:$0xff]   ;;  %v730_v12 = vld [vmem:[%s906_s4 + $0x8] sm:$0xff]  }
  0x1a   :  { %497 = vxpose.xlu0.c.b16.start [1/8] (narrow) %v729_v18, 16  ;;  %v568_v21 = vld [vmem:[%s904_s2] ss:$0 sm:$0xff]  ;;  %v736_v18 = vld [vmem:[%s906_s4 + $0x38] sm:$0xff]  }
  0x1b   :  { %663 = vmatpush3.bf16.msra.mxu1 %v725_v13  ;;  %v731_v13 = vld [vmem:[%s906_s4 + $0x10] sm:$0xff]  }
  0x1c   :  { %664 = vmatprep.subr.bf16.mxu1 %v726_v15 }
  0x1e   :  { %651 = vmatmul.mubr.msk.bf16.gmra.mxu1 %vm87_vm1, %v720_v14  ;;  %498 = vxpose.xlu0.c.b16.cont [2/8] (narrow) %v730_v12, 16  ;;  %v732_v14 = vld [vmem:[%s906_s4 + $0x18] sm:$0xff]  }
  0x1f   :  { %665 = vmatpush3.bf16.msra.mxu1 %v726_v15  ;;  %v733_v15 = vld [vmem:[%s906_s4 + $0x20] sm:$0xff]  }
  0x20   :  { %666 = vmatprep.subr.bf16.mxu1 %v727_v16 }
  0x22   :  { %499 = vxpose.xlu0.c.b16.cont [3/8] (narrow) %v731_v13, 16 }
  0x23   :  { %667 = vmatpush3.bf16.msra.mxu1 %v727_v16  ;;  %v734_v16 = vld [vmem:[%s906_s4 + $0x28] sm:$0xff]  }
  0x24   :  { %668 = vmatprep.subr.bf16.mxu1 %v728_v17 }
  0x26   :  { %500 = vxpose.xlu0.c.b16.cont [4/8] (narrow) %v732_v14, 16 }
  0x27   :  { %669 = vmatpush3.bf16.msra.mxu1 %v728_v17  ;;  %v735_v17 = vld [vmem:[%s906_s4 + $0x30] sm:$0xff]  }
  0x2a   :  { %501 = vxpose.xlu0.c.b16.cont [5/8] (narrow) %v733_v15, 16 }
  0x2e   :  { %502 = vxpose.xlu0.c.b16.cont [6/8] (narrow) %v734_v16, 16 }
  0x32   :  { %503 = vxpose.xlu0.c.b16.cont [7/8] (narrow) %v735_v17, 16 }
  0x36   :  { %504 = vxpose.xlu0.c.b16.end [8/8] (narrow) %v736_v18, 16 }
  0x7c   :  { %v505_v15 = vpop.trf.xlu0 }
  0xc6   :  { %v640_v19 = vpop.f32.mrf.mxu1 }
  0xc7   :  { %v159_v25 = vadd.f32 %v640_v19, %v568_v21  ;;  %v759_v19 = vmov 0.0  }
  0xc8   :  { %v150_v20 = vpop.f32.mrf.mxu1  ;;  %686 = vmatprep.subr.bf16.mxu0 %v759_v19  ;;  %702 = vmatprep.mubr.msk.bf16.mxu0 %vm760_vm2, %v759_v19 }
  0xc9   :  { %v151_v23 = vadd.f32 %v568_v21, %v150_v20  ;;  %v215_v32 = vmax.f32 %v159_v25, 0.0  ;;  %v443_v20 = vld [vmem:[%s907_s5] sm:$0xff] }
  0xca   :  { %v641_v22 = vpop.f32.mrf.mxu1 }
  0xcb   :  { %v162_v24 = vadd.f32 %v641_v22, %v568_v21  ;;  %v213_v30 = vmax.f32 %v151_v23, 0.0  ;;  %v585_v23 = vld [vmem:[%s904_s2 + $0x1] ss:$0 sm:$0xff]  ;;  %s762_s2 = smov [#allocation2]  }
  0xcc   :  { %v153_v26 = vpop.f32.mrf.mxu1  ;;  %s560_s4 = sshll.u32 %s762_s2, 4  ;;  %s561_s4 = int_to_ptr.vmem [resolvable:$true] %s560_s4 }
  0xcd   :  { %v154_v27 = vadd.f32 %v568_v21, %v153_v26  ;;  %v216_v28 = vmax.f32 %v162_v24, 0.0  ;;  %s737_s5 = scalar_lea.vmem %s561_s4, 128  ;;  %p742_p1 = scmp.lt.s32.totalorder %s561_s4, %s561_s4 }
  0xce   :  { %v644_v29 = vpop.f32.mrf.mxu1  ;;  %p738_p0 = scmp.ne.s32.totalorder %s561_s4, %s737_s5  ;;  %p743_p2 = scmp.lt.s32.totalorder %s737_s5, %s737_s5 }
  0xcf   :  { %v214_v31 = vmax.f32 %v154_v27, 0.0  ;;  %v230_v35 = vpack.c.bf16 %v216_v28, %v215_v32  ;;  %v175_v39 = vadd.f32 %v644_v29, %v568_v21 }
  0xd0   :  { %v166_v33 = vpop.f32.mrf.mxu1  ;;  %p744_p3 = por %p743_p2, %p742_p1 }
  0xd1   :  { %v229_v34 = vpack.c.bf16 %v214_v31, %v213_v30  ;;  %v167_v37 = vadd.f32 %v568_v21, %v166_v33  ;;  %v219_v46 = vmax.f32 %v175_v39, 0.0 }
  0xd2   :  { %v645_v36 = vpop.f32.mrf.mxu1  ;;  %p745_p4 = pnand %p744_p3, %p738_p0 }
  0xd3   :  { %v178_v38 = vadd.f32 %v645_v36, %v568_v21  ;;  %670 = vmatprep.mubr.bf16.mxu1 %v229_v34  ;;  %v217_v44 = vmax.f32 %v167_v37, 0.0 }
  0xd4   :  { %v169_v40 = vpop.f32.mrf.mxu1  ;;  %671 = vmatmul.mubr.bf16.vlgmr.msra.gmra.mxu1 %v230_v35 }
  0xd5   :  { %v170_v41 = vadd.f32 %v568_v21, %v169_v40  ;;  %v220_v42 = vmax.f32 %v178_v38, 0.0 }
  0xd6   :  { %v648_v43 = vpop.f32.mrf.mxu1 }
  0xd7   :  { %v218_v45 = vmax.f32 %v170_v41, 0.0  ;;  %v232_v49 = vpack.c.bf16 %v220_v42, %v219_v46  ;;  %v191_v53 = vadd.f32 %v648_v43, %v568_v21 }
  0xd8   :  { %v182_v47 = vpop.f32.mrf.mxu1 }
  0xd9   :  { %v231_v48 = vpack.c.bf16 %v218_v45, %v217_v44  ;;  %v183_v51 = vadd.f32 %v568_v21, %v182_v47  ;;  %v223_v60 = vmax.f32 %v191_v53, 0.0 }
  0xda   :  { %v649_v50 = vpop.f32.mrf.mxu1 }
  0xdb   :  { %v194_v52 = vadd.f32 %v649_v50, %v568_v21  ;;  %674 = vmatprep.mubr.bf16.mxu1 %v231_v48  ;;  %v221_v58 = vmax.f32 %v183_v51, 0.0 }
  0xdc   :  { %v185_v54 = vpop.f32.mrf.mxu1  ;;  %675 = vmatmul.mubr.bf16.gmra.mxu1 %v232_v49 }
  0xdd   :  { %v186_v55 = vadd.f32 %v568_v21, %v185_v54  ;;  %v224_v56 = vmax.f32 %v194_v52, 0.0 }
  0xde   :  { %v652_v57 = vpop.f32.mrf.mxu1 }
  0xdf   :  { %v222_v59 = vmax.f32 %v186_v55, 0.0  ;;  %v234_v63 = vpack.c.bf16 %v224_v56, %v223_v60  ;;  %v207_v3 = vadd.f32 %v652_v57, %v568_v21 }
  0xe0   :  { %v198_v61 = vpop.f32.mrf.mxu1 }
  0xe1   :  { %v233_v62 = vpack.c.bf16 %v222_v59, %v221_v58  ;;  %v199_v1 = vadd.f32 %v568_v21, %v198_v61  ;;  %v227_v9 = vmax.f32 %v207_v3, 0.0 }
  0xe2   :  { %v653_v0 = vpop.f32.mrf.mxu1 }
  0xe3   :  { %v210_v2 = vadd.f32 %v653_v0, %v568_v21  ;;  %678 = vmatprep.mubr.bf16.mxu1 %v233_v62  ;;  %v225_v7 = vmax.f32 %v199_v1, 0.0 }
  0xe4   :  { %v201_v4 = vpop.f32.mrf.mxu1  ;;  %679 = vmatmul.mubr.bf16.gmra.mxu1 %v234_v63 }
  0xe5   :  { %v202_v5 = vadd.f32 %v568_v21, %v201_v4  ;;  %v228_v6 = vmax.f32 %v210_v2, 0.0  ;;  %v761_v21 = vmov 0  }
  0xe6   :  { %711 = vset.pattern.permute.xlu1 %v761_v21  ;;  %712 = vset.pattern.permute.xlu0 %v761_v21 }
  0xe7   :  { %v226_v8 = vmax.f32 %v202_v5, 0.0  ;;  %v236_v11 = vpack.c.bf16 %v228_v6, %v227_v9  ;;  %446 = vperm.xlu1 %711, %v443_v20  }
  0xe9   :  { %v235_v10 = vpack.c.bf16 %v226_v8, %v225_v7 }
  0xeb   :  { %682 = vmatprep.mubr.bf16.mxu1 %v235_v10 }
  0xec   :  { %683 = vmatmul.mubr.bf16.gmra.mxu1 %v236_v11 }
 0x162   :  { %v447_v16 = vpop.permute.xlu1 %446 }
 0x194   :  { %v672_v22 = vpop.f32.mrf.mxu1 }
 0x195   :  { %v349_v25 = vadd.f32 %v672_v22, %v585_v23 }
 0x196   :  { %v340_v24 = vpop.f32.mrf.mxu1 }
 0x197   :  { %v341_v27 = vadd.f32 %v585_v23, %v340_v24  ;;  %v405_v30 = vmax.f32 %v349_v25, 0.0 }
 0x198   :  { %v673_v26 = vpop.f32.mrf.mxu1 }
 0x199   :  { %v352_v28 = vadd.f32 %v673_v26, %v585_v23  ;;  %v403_v34 = vmax.f32 %v341_v27, 0.0 }
 0x19a   :  { %v343_v29 = vpop.f32.mrf.mxu1 }
 0x19b   :  { %v406_v31 = vmax.f32 %v352_v28, 0.0  ;;  %v344_v32 = vadd.f32 %v585_v23, %v343_v29 }
 0x19c   :  { %v676_v33 = vpop.f32.mrf.mxu1 }
 0x19d   :  { %v436_v35 = vpack.c.bf16 %v406_v31, %v405_v30  ;;  %v404_v36 = vmax.f32 %v344_v32, 0.0  ;;  %v365_v6 = vadd.f32 %v676_v33, %v585_v23 }
 0x19e   :  { %v356_v37 = vpop.f32.mrf.mxu1 }
 0x19f   :  { %v435_v38 = vpack.c.bf16 %v404_v36, %v403_v34  ;;  %v409_v8 = vmax.f32 %v365_v6, 0.0  ;;  %v357_v11 = vadd.f32 %v585_v23, %v356_v37 }
 0x1a0   :  { %v677_v39 = vpop.f32.mrf.mxu1 }
 0x1a1   :  { %v368_v4 = vadd.f32 %v677_v39, %v585_v23  ;;  %v407_v13 = vmax.f32 %v357_v11, 0.0 }
 0x1a2   :  { %v359_v40 = vpop.f32.mrf.mxu1 }
 0x1a3   :  { %v410_v7 = vmax.f32 %v368_v4, 0.0  ;;  %v360_v10 = vadd.f32 %v585_v23, %v359_v40 }
 0x1a4   :  { %v680_v41 = vpop.f32.mrf.mxu1 }
 0x1a5   :  { %v381_v60 = vadd.f32 %v680_v41, %v585_v23  ;;  %v438_v9 = vpack.c.bf16 %v410_v7, %v409_v8  ;;  %v408_v12 = vmax.f32 %v360_v10, 0.0 }
 0x1a6   :  { %v372_v42 = vpop.f32.mrf.mxu1 }
 0x1a7   :  { %v413_v62 = vmax.f32 %v381_v60, 0.0  ;;  %v373_v1 = vadd.f32 %v585_v23, %v372_v42  ;;  %v437_v14 = vpack.c.bf16 %v408_v12, %v407_v13 }
 0x1a8   :  { %v681_v43 = vpop.f32.mrf.mxu1 }
 0x1a9   :  { %v384_v58 = vadd.f32 %v681_v43, %v585_v23  ;;  %v411_v3 = vmax.f32 %v373_v1, 0.0 }
 0x1aa   :  { %v375_v44 = vpop.f32.mrf.mxu1 }
 0x1ab   :  { %v414_v61 = vmax.f32 %v384_v58, 0.0  ;;  %v376_v0 = vadd.f32 %v585_v23, %v375_v44 }
 0x1ac   :  { %v684_v45 = vpop.f32.mrf.mxu1 }
 0x1ad   :  { %v397_v47 = vadd.f32 %v684_v45, %v585_v23  ;;  %v440_v63 = vpack.c.bf16 %v414_v61, %v413_v62  ;;  %v412_v2 = vmax.f32 %v376_v0, 0.0 }
 0x1ae   :  { %v388_v46 = vpop.f32.mrf.mxu1 }
 0x1af   :  { %v417_v51 = vmax.f32 %v397_v47, 0.0  ;;  %v389_v55 = vadd.f32 %v585_v23, %v388_v46  ;;  %v439_v5 = vpack.c.bf16 %v412_v2, %v411_v3 }
 0x1b0   :  { %v685_v48 = vpop.f32.mrf.mxu1 }
 0x1b1   :  { %v400_v49 = vadd.f32 %v685_v48, %v585_v23  ;;  %v415_v57 = vmax.f32 %v389_v55, 0.0 }
 0x1b2   :  { %v391_v50 = vpop.f32.mrf.mxu1 }
 0x1b3   :  { %v418_v52 = vmax.f32 %v400_v49, 0.0  ;;  %v392_v53 = vadd.f32 %v585_v23, %v391_v50 }
 0x1b5   :  { %v442_v54 = vpack.c.bf16 %v418_v52, %v417_v51  ;;  %v416_v56 = vmax.f32 %v392_v53, 0.0 }
 0x1b7   :  { %687 = vmatpush3.bf16.xpose.msra.mxu0 %v442_v54  ;;  %v441_v59 = vpack.c.bf16 %v416_v56, %v415_v57 }
 0x1b8   :  { %688 = vmatprep.subr.bf16.mxu0 %v759_v19 }
 0x1bf   :  { %689 = vmatpush3.bf16.xpose.msra.mxu0 %v441_v59 }
 0x1c0   :  { %690 = vmatprep.subr.bf16.mxu0 %v759_v19 }
 0x1c7   :  { %691 = vmatpush3.bf16.xpose.msra.mxu0 %v440_v63 }
 0x1c8   :  { %692 = vmatprep.subr.bf16.mxu0 %v759_v19 }
 0x1cf   :  { %693 = vmatpush3.bf16.xpose.msra.mxu0 %v439_v5 }
 0x1d0   :  { %694 = vmatprep.subr.bf16.mxu0 %v759_v19 }
 0x1d7   :  { %695 = vmatpush3.bf16.xpose.msra.mxu0 %v438_v9 }
 0x1d8   :  { %696 = vmatprep.subr.bf16.mxu0 %v759_v19 }
 0x1df   :  { %697 = vmatpush3.bf16.xpose.msra.mxu0 %v437_v14 }
 0x1e0   :  { %698 = vmatprep.subr.bf16.mxu0 %v759_v19 }
 0x1e7   :  { %699 = vmatpush3.bf16.xpose.msra.mxu0 %v436_v35 }
 0x1e8   :  { %700 = vmatprep.subr.bf16.mxu0 %v759_v19 }
 0x1ef   :  { %701 = vmatpush3.bf16.xpose.msra.mxu0 %v435_v38 }
 0x1f6   :  { %703 = vmatmul.mubr.bf16.vlgmr.msra.gmra.mxu0 %v505_v15 }
 0x2b6   :  { %v547_v17 = vpop.f32.mrf.mxu0 }
 0x2b7   :  { %v548_v18 = vadd.f32 %v547_v17, %v447_v16 }
 0x2b8   :  { %v704_v20 = vpop.f32.mrf.mxu0 }
 0x2b9   :  { %553 = vst [vmem:[#allocation2] sm:$0xff] %v548_v18 }
 0x2ba   :  { %v550_v21 = vpop.f32.mrf.mxu0 }
 0x2bb   :  { %748 = shalt.err (!%p745_p4)
}
 0x2bc   :  { %563 = dma.vmem_to_hbm [thread:$0]  %s561_s4, 128, %s908_s6, [#allocation3]   ;;  %v705_v19 = vpop.f32.mrf.mxu0 }
 0x2bd   :  { %757 = dma.done.wait [#allocation3], 128  }
 0x2be   :  { %758 = vsyncadd [#allocation3], 4294967168 }
 0x2bf   :  { %567 = vsyncpa [#allocation3], 1 }

</bundles_post_ra>
